<compile_context>
chip_gen: v7x
topology: tpu7x:2x2x1
jax: 0.10.0
libtpu: 0.0.40
codegen_flags: <defaults>
</compile_context>

<pallas_src>
import functools

import jax
import jax.numpy as jnp
from jax.experimental import pallas as pl
from jax.experimental.pallas import tpu as pltpu


def _dsc_fused_kernel(x_ref, wm_ref, wf_ref, y_ref, out_ref, cat_ref, xp_ref,
                      *, K, W, padding, Cout):
    # x_ref  : (1, Cin, H*W)      one image, channels on sublanes, H*W on lanes
    # wm_ref : (K, Ho*Wo)         per-kw column-validity masks (0/1)
    # wf_ref : (Cout, K*K*Cin)    fused depthwise*pointwise weights
    # y_ref  : (1, Cy, Ho*Wo)     tensor concatenated after the conv output
    # out_ref: (1, Cout, Ho*Wo)
    # cat_ref: (1, Cout+Cy, Ho*Wo)
    # xp_ref : (Cin, H*W + 2*flat_pad)  VMEM scratch: flat halo-padded image
    Cin = x_ref.shape[1]
    HW = x_ref.shape[2]
    HoWo = out_ref.shape[2]
    flat_pad = padding * W + padding          # flattened halo on each side

    # Build the halo-padded flat image in VMEM (zero halos, copy interior).
    if flat_pad > 0:
        halo = jnp.zeros((Cin, flat_pad), dtype=xp_ref.dtype)
        xp_ref[:, :flat_pad] = halo
        xp_ref[:, flat_pad + HW:] = halo
    xp_ref[:, flat_pad:flat_pad + HW] = x_ref[0]

    wm = wm_ref[...]                          # (K, HoWo)
    wf = wf_ref[...]                          # (Cout, K*K*Cin)

    acc = jnp.zeros((Cout, HoWo), jnp.float32)
    for kh in range(K):
        for kw in range(K):
            off = kh * W + kw                 # constant flat shift of this tap
            tap = xp_ref[:, off:off + HoWo]   # (Cin, HoWo) shifted window
            tap = tap * wm[kw:kw + 1, :]      # zero columns that wrapped rows
            t = kh * K + kw
            wft = wf[:, t * Cin:(t + 1) * Cin]          # (Cout, Cin)
            acc = acc + jnp.dot(wft, tap,
                                preferred_element_type=jnp.float32)

    out_ref[0] = acc.astype(out_ref.dtype)
    cat_ref[0, :Cout, :] = acc.astype(cat_ref.dtype)
    cat_ref[0, Cout:, :] = y_ref[0].astype(cat_ref.dtype)


def _dsc2d_xla(x, y, w_dw, w_pw, *, stride, padding):
    """Plain-XLA path (PyTorch-equivalent NCHW convs). Used as reference and
    as the fallback for non-'same' configurations."""
    dw = jax.lax.conv_general_dilated(
        x, w_dw, window_strides=(stride, stride),
        padding=[(padding, padding), (padding, padding)],
        dimension_numbers=("NCHW", "OIHW", "NCHW"),
        feature_group_count=x.shape[1],
        precision=jax.lax.Precision.HIGHEST)
    out = jax.lax.conv_general_dilated(
        dw, w_pw, window_strides=(1, 1), padding=[(0, 0), (0, 0)],
        dimension_numbers=("NCHW", "OIHW", "NCHW"),
        precision=jax.lax.Precision.HIGHEST)
    return out, jnp.concatenate([out, y], axis=1)


def dsc2d_forward(x, y, w_dw, w_pw, *, stride, padding):
    """Matches DSC2d.forward: returns (out, cat), both NCHW."""
    N, Cin, H, W = x.shape
    K = w_dw.shape[-1]
    Cout = w_pw.shape[0]

    if not (stride == 1 and 2 * padding == K - 1):
        # TODO(synk): the Pallas fast path covers the 'same'-shaped depthwise
        # config (stride=1, 2*padding == kernel-1); other configs fall back to
        # XLA convs (extend with strided-row DMA / halo row-tiling if needed).
        return _dsc2d_xla(x, y, w_dw, w_pw, stride=stride, padding=padding)

    Ho, Wo = H, W                              # 'same' spatial size
    HoWo = Ho * Wo
    Ny, Cy, Hy, Wy = y.shape
    assert (Ny, Hy, Wy) == (N, Ho, Wo), "torch.cat requires matching N/H/W"

    dtype = x.dtype
    x_flat = x.reshape(N, Cin, H * W)          # free: contiguous NCHW reshape
    y_flat = y.reshape(N, Cy, HoWo)

    # Fused weights: Wf[o, (kh*K + kw)*Cin + c] = wdw[c, kh, kw] * wpw[o, c].
    wdw = w_dw[:, 0].astype(jnp.float32)       # (Cin, K, K)
    wpw = w_pw[:, :, 0, 0].astype(jnp.float32)  # (Cout, Cin)
    wf = wpw[:, None, None, :] * jnp.transpose(wdw, (1, 2, 0))[None]
    wf = wf.reshape(Cout, K * K * Cin).astype(dtype)

    # Column-validity masks: tap kw at output column wo reads input column
    # wo + kw - padding, valid iff it lies in [0, W).
    wo_idx = jnp.arange(HoWo, dtype=jnp.int32) % Wo
    kw_idx = jnp.arange(K, dtype=jnp.int32)[:, None]
    wm = ((wo_idx[None, :] >= padding - kw_idx)
          & (wo_idx[None, :] < W + padding - kw_idx)).astype(dtype)  # (K, HoWo)

    flat_pad = padding * W + padding
    kernel = functools.partial(_dsc_fused_kernel, K=K, W=W,
                               padding=padding, Cout=Cout)

    out_flat, cat_flat = pl.pallas_call(
        kernel,
        out_shape=(jax.ShapeDtypeStruct((N, Cout, HoWo), dtype),
                   jax.ShapeDtypeStruct((N, Cout + Cy, HoWo), dtype)),
        grid_spec=pltpu.PrefetchScalarGridSpec(
            num_scalar_prefetch=0,
            grid=(N,),
            in_specs=[
                pl.BlockSpec((1, Cin, H * W), lambda n: (n, 0, 0)),
                pl.BlockSpec((K, HoWo), lambda n: (0, 0)),
                pl.BlockSpec((Cout, K * K * Cin), lambda n: (0, 0)),
                pl.BlockSpec((1, Cy, HoWo), lambda n: (n, 0, 0)),
            ],
            out_specs=(
                pl.BlockSpec((1, Cout, HoWo), lambda n: (n, 0, 0)),
                pl.BlockSpec((1, Cout + Cy, HoWo), lambda n: (n, 0, 0)),
            ),
            scratch_shapes=[pltpu.VMEM((Cin, H * W + 2 * flat_pad), dtype)],
        ),
        compiler_params=pltpu.CompilerParams(
            dimension_semantics=("parallel",)),
    )(x_flat, wm, wf, y_flat)

    out = out_flat.reshape(N, Cout, Ho, Wo)    # free reshape back to NCHW
    cat = cat_flat.reshape(N, Cout + Cy, Ho, Wo)
    return out, cat


if __name__ == "__main__":
    # Small shapes consistent with the module.
    N, in_ch, out_ch = 2, 4, 8
    H = W = 16
    K, stride, padding = 3, 1, 1
    y_ch = 3  # extra channels concatenated along dim=1

    key = jax.random.PRNGKey(0)
    kx, ky, kdw, kpw = jax.random.split(key, 4)

    x = jax.random.normal(kx, (N, in_ch, H, W), dtype=jnp.float32)
    y = jax.random.normal(ky, (N, y_ch, H, W), dtype=jnp.float32)

    # Parameter shapes as in nn.Conv2d of DSC2d.__init__ (bias=False for both).
    w_dw = jax.random.normal(kdw, (in_ch, 1, K, K), dtype=jnp.float32) * 0.1
    w_pw = jax.random.normal(kpw, (out_ch, in_ch, 1, 1), dtype=jnp.float32) * 0.1

    fwd = jax.jit(functools.partial(dsc2d_forward, stride=stride,
                                    padding=padding))
    out, cat = fwd(x, y, w_dw, w_pw)
    out = jax.block_until_ready(out)
    cat = jax.block_until_ready(cat)

    out_ref, cat_ref = _dsc2d_xla(x, y, w_dw, w_pw,
                                  stride=stride, padding=padding)

    assert out.shape == (N, out_ch, H, W), out.shape
    assert cat.shape == (N, out_ch + y_ch, H, W), cat.shape
    assert jnp.allclose(out, out_ref, atol=1e-5, rtol=1e-4), \
        float(jnp.max(jnp.abs(out - out_ref)))
    assert jnp.allclose(cat, cat_ref, atol=1e-5, rtol=1e-4)

    print("KERNEL_OK")
</pallas_src>

<mosaic_0001>
module attributes {stable_mosaic.version = 11 : i64} {
  func.func @_dsc_fused_kernel(%arg0: i32, %arg1: memref<1x4x256xf32, #tpu.memory_space<vmem>>, %arg2: memref<3x256xf32, #tpu.memory_space<vmem>>, %arg3: memref<8x36xf32, #tpu.memory_space<vmem>>, %arg4: memref<1x3x256xf32, #tpu.memory_space<vmem>>, %arg5: memref<1x8x256xf32, #tpu.memory_space<vmem>>, %arg6: memref<1x11x256xf32, #tpu.memory_space<vmem>>, %arg7: memref<4x290xf32, #tpu.memory_space<vmem>>) attributes {dimension_semantics = [#tpu.dimension_semantics<parallel>], iteration_bounds = array<i64: 2>, scalar_prefetch = 0 : i64, scratch_operands = 1 : i64, tpu.core_type = #tpu.core_type<tc>, window_params = [{transform_indices = @transform_0, window_bounds = array<i64: 1, 4, 256>}, {pipeline_mode = #tpu.pipeline_mode<synchronous>, transform_indices = @transform_1, window_bounds = array<i64: 3, 256>}, {pipeline_mode = #tpu.pipeline_mode<synchronous>, transform_indices = @transform_2, window_bounds = array<i64: 8, 36>}, {transform_indices = @transform_3, window_bounds = array<i64: 1, 3, 256>}, {transform_indices = @transform_4, window_bounds = array<i64: 1, 8, 256>}, {transform_indices = @transform_5, window_bounds = array<i64: 1, 11, 256>}]} {
    %cst = arith.constant 0.000000e+00 : f32
    %0 = vector.broadcast %cst : f32 to vector<4x17xf32>
    %c0 = arith.constant 0 : index
    %c0_0 = arith.constant 0 : index
    %1 = vector.load %arg7[%c0, %c0_0] : memref<4x290xf32, #tpu.memory_space<vmem>>, vector<4x17xf32>
    tpu.vector_store %arg7[%c0, %c0_0], %0 {strides = array<i32>} : memref<4x290xf32, #tpu.memory_space<vmem>>, vector<4x17xf32>,
    %c0_1 = arith.constant 0 : index
    %c273 = arith.constant 273 : index
    %2 = vector.load %arg7[%c0_1, %c273] : memref<4x290xf32, #tpu.memory_space<vmem>>, vector<4x17xf32>
    tpu.vector_store %arg7[%c0_1, %c273], %0 {strides = array<i32>} : memref<4x290xf32, #tpu.memory_space<vmem>>, vector<4x17xf32>,
    %c0_2 = arith.constant 0 : index
    %c0_3 = arith.constant 0 : index
    %c0_4 = arith.constant 0 : index
    %3 = vector.load %arg1[%c0_2, %c0_3, %c0_4] : memref<1x4x256xf32, #tpu.memory_space<vmem>>, vector<1x4x256xf32>
    %4 = vector.shape_cast %3 : vector<1x4x256xf32> to vector<4x256xf32>
    %c0_5 = arith.constant 0 : index
    %c17 = arith.constant 17 : index
    %5 = vector.load %arg7[%c0_5, %c17] : memref<4x290xf32, #tpu.memory_space<vmem>>, vector<4x256xf32>
    tpu.vector_store %arg7[%c0_5, %c17], %4 {strides = array<i32>} : memref<4x290xf32, #tpu.memory_space<vmem>>, vector<4x256xf32>,
    %c0_6 = arith.constant 0 : index
    %c0_7 = arith.constant 0 : index
    %6 = vector.load %arg2[%c0_6, %c0_7] : memref<3x256xf32, #tpu.memory_space<vmem>>, vector<3x256xf32>
    %c0_8 = arith.constant 0 : index
    %c0_9 = arith.constant 0 : index
    %7 = vector.load %arg3[%c0_8, %c0_9] : memref<8x36xf32, #tpu.memory_space<vmem>>, vector<8x36xf32>
    %cst_10 = arith.constant 0.000000e+00 : f32
    %8 = vector.broadcast %cst_10 : f32 to vector<8x256xf32>
    %c0_11 = arith.constant 0 : index
    %c0_12 = arith.constant 0 : index
    %9 = vector.load %arg7[%c0_11, %c0_12] : memref<4x290xf32, #tpu.memory_space<vmem>>, vector<4x256xf32>
    %10 = vector.extract_strided_slice %6 {offsets = [0, 0], sizes = [1, 256], strides = [1, 1]} : vector<3x256xf32> to vector<1x256xf32>
    %11 = vector.broadcast %10 : vector<1x256xf32> to vector<4x256xf32>
    %12 = arith.mulf %9, %11 : vector<4x256xf32>
    %13 = vector.extract_strided_slice %7 {offsets = [0, 0], sizes = [8, 4], strides = [1, 1]} : vector<8x36xf32> to vector<8x4xf32>
    %cst_13 = arith.constant dense<0.000000e+00> : vector<8x256xf32>
    %14 = tpu.matmul %13, %12, %cst_13 {dimension_numbers = #tpu.dot_dimension_numbers<[1], [0], [0], [1], [0, 0, 1, 1], [], []>} : vector<8x4xf32>, vector<4x256xf32>, vector<8x256xf32> -> vector<8x256xf32>
    %15 = arith.addf %8, %14 : vector<8x256xf32>
    %c0_14 = arith.constant 0 : index
    %c1 = arith.constant 1 : index
    %16 = vector.load %arg7[%c0_14, %c1] : memref<4x290xf32, #tpu.memory_space<vmem>>, vector<4x256xf32>
    %17 = vector.extract_strided_slice %6 {offsets = [1, 0], sizes = [1, 256], strides = [1, 1]} : vector<3x256xf32> to vector<1x256xf32>
    %18 = vector.broadcast %17 : vector<1x256xf32> to vector<4x256xf32>
    %19 = arith.mulf %16, %18 : vector<4x256xf32>
    %20 = vector.extract_strided_slice %7 {offsets = [0, 4], sizes = [8, 4], strides = [1, 1]} : vector<8x36xf32> to vector<8x4xf32>
    %cst_15 = arith.constant dense<0.000000e+00> : vector<8x256xf32>
    %21 = tpu.matmul %20, %19, %cst_15 {dimension_numbers = #tpu.dot_dimension_numbers<[1], [0], [0], [1], [0, 0, 1, 1], [], []>} : vector<8x4xf32>, vector<4x256xf32>, vector<8x256xf32> -> vector<8x256xf32>
    %22 = arith.addf %15, %21 : vector<8x256xf32>
    %c0_16 = arith.constant 0 : index
    %c2 = arith.constant 2 : index
    %23 = vector.load %arg7[%c0_16, %c2] : memref<4x290xf32, #tpu.memory_space<vmem>>, vector<4x256xf32>
    %24 = vector.extract_strided_slice %6 {offsets = [2, 0], sizes = [1, 256], strides = [1, 1]} : vector<3x256xf32> to vector<1x256xf32>
    %25 = vector.broadcast %24 : vector<1x256xf32> to vector<4x256xf32>
    %26 = arith.mulf %23, %25 : vector<4x256xf32>
    %27 = vector.extract_strided_slice %7 {offsets = [0, 8], sizes = [8, 4], strides = [1, 1]} : vector<8x36xf32> to vector<8x4xf32>
    %cst_17 = arith.constant dense<0.000000e+00> : vector<8x256xf32>
    %28 = tpu.matmul %27, %26, %cst_17 {dimension_numbers = #tpu.dot_dimension_numbers<[1], [0], [0], [1], [0, 0, 1, 1], [], []>} : vector<8x4xf32>, vector<4x256xf32>, vector<8x256xf32> -> vector<8x256xf32>
    %29 = arith.addf %22, %28 : vector<8x256xf32>
    %c0_18 = arith.constant 0 : index
    %c16 = arith.constant 16 : index
    %30 = vector.load %arg7[%c0_18, %c16] : memref<4x290xf32, #tpu.memory_space<vmem>>, vector<4x256xf32>
    %31 = vector.extract_strided_slice %6 {offsets = [0, 0], sizes = [1, 256], strides = [1, 1]} : vector<3x256xf32> to vector<1x256xf32>
    %32 = vector.broadcast %31 : vector<1x256xf32> to vector<4x256xf32>
    %33 = arith.mulf %30, %32 : vector<4x256xf32>
    %34 = vector.extract_strided_slice %7 {offsets = [0, 12], sizes = [8, 4], strides = [1, 1]} : vector<8x36xf32> to vector<8x4xf32>
    %cst_19 = arith.constant dense<0.000000e+00> : vector<8x256xf32>
    %35 = tpu.matmul %34, %33, %cst_19 {dimension_numbers = #tpu.dot_dimension_numbers<[1], [0], [0], [1], [0, 0, 1, 1], [], []>} : vector<8x4xf32>, vector<4x256xf32>, vector<8x256xf32> -> vector<8x256xf32>
    %36 = arith.addf %29, %35 : vector<8x256xf32>
    %c0_20 = arith.constant 0 : index
    %c17_21 = arith.constant 17 : index
    %37 = vector.load %arg7[%c0_20, %c17_21] : memref<4x290xf32, #tpu.memory_space<vmem>>, vector<4x256xf32>
    %38 = vector.extract_strided_slice %6 {offsets = [1, 0], sizes = [1, 256], strides = [1, 1]} : vector<3x256xf32> to vector<1x256xf32>
    %39 = vector.broadcast %38 : vector<1x256xf32> to vector<4x256xf32>
    %40 = arith.mulf %37, %39 : vector<4x256xf32>
    %41 = vector.extract_strided_slice %7 {offsets = [0, 16], sizes = [8, 4], strides = [1, 1]} : vector<8x36xf32> to vector<8x4xf32>
    %cst_22 = arith.constant dense<0.000000e+00> : vector<8x256xf32>
    %42 = tpu.matmul %41, %40, %cst_22 {dimension_numbers = #tpu.dot_dimension_numbers<[1], [0], [0], [1], [0, 0, 1, 1], [], []>} : vector<8x4xf32>, vector<4x256xf32>, vector<8x256xf32> -> vector<8x256xf32>
    %43 = arith.addf %36, %42 : vector<8x256xf32>
    %c0_23 = arith.constant 0 : index
    %c18 = arith.constant 18 : index
    %44 = vector.load %arg7[%c0_23, %c18] : memref<4x290xf32, #tpu.memory_space<vmem>>, vector<4x256xf32>
    %45 = vector.extract_strided_slice %6 {offsets = [2, 0], sizes = [1, 256], strides = [1, 1]} : vector<3x256xf32> to vector<1x256xf32>
    %46 = vector.broadcast %45 : vector<1x256xf32> to vector<4x256xf32>
    %47 = arith.mulf %44, %46 : vector<4x256xf32>
    %48 = vector.extract_strided_slice %7 {offsets = [0, 20], sizes = [8, 4], strides = [1, 1]} : vector<8x36xf32> to vector<8x4xf32>
    %cst_24 = arith.constant dense<0.000000e+00> : vector<8x256xf32>
    %49 = tpu.matmul %48, %47, %cst_24 {dimension_numbers = #tpu.dot_dimension_numbers<[1], [0], [0], [1], [0, 0, 1, 1], [], []>} : vector<8x4xf32>, vector<4x256xf32>, vector<8x256xf32> -> vector<8x256xf32>
    %50 = arith.addf %43, %49 : vector<8x256xf32>
    %c0_25 = arith.constant 0 : index
    %c32 = arith.constant 32 : index
    %51 = vector.load %arg7[%c0_25, %c32] : memref<4x290xf32, #tpu.memory_space<vmem>>, vector<4x256xf32>
    %52 = vector.extract_strided_slice %6 {offsets = [0, 0], sizes = [1, 256], strides = [1, 1]} : vector<3x256xf32> to vector<1x256xf32>
    %53 = vector.broadcast %52 : vector<1x256xf32> to vector<4x256xf32>
    %54 = arith.mulf %51, %53 : vector<4x256xf32>
    %55 = vector.extract_strided_slice %7 {offsets = [0, 24], sizes = [8, 4], strides = [1, 1]} : vector<8x36xf32> to vector<8x4xf32>
    %cst_26 = arith.constant dense<0.000000e+00> : vector<8x256xf32>
    %56 = tpu.matmul %55, %54, %cst_26 {dimension_numbers = #tpu.dot_dimension_numbers<[1], [0], [0], [1], [0, 0, 1, 1], [], []>} : vector<8x4xf32>, vector<4x256xf32>, vector<8x256xf32> -> vector<8x256xf32>
    %57 = arith.addf %50, %56 : vector<8x256xf32>
    %c0_27 = arith.constant 0 : index
    %c33 = arith.constant 33 : index
    %58 = vector.load %arg7[%c0_27, %c33] : memref<4x290xf32, #tpu.memory_space<vmem>>, vector<4x256xf32>
    %59 = vector.extract_strided_slice %6 {offsets = [1, 0], sizes = [1, 256], strides = [1, 1]} : vector<3x256xf32> to vector<1x256xf32>
    %60 = vector.broadcast %59 : vector<1x256xf32> to vector<4x256xf32>
    %61 = arith.mulf %58, %60 : vector<4x256xf32>
    %62 = vector.extract_strided_slice %7 {offsets = [0, 28], sizes = [8, 4], strides = [1, 1]} : vector<8x36xf32> to vector<8x4xf32>
    %cst_28 = arith.constant dense<0.000000e+00> : vector<8x256xf32>
    %63 = tpu.matmul %62, %61, %cst_28 {dimension_numbers = #tpu.dot_dimension_numbers<[1], [0], [0], [1], [0, 0, 1, 1], [], []>} : vector<8x4xf32>, vector<4x256xf32>, vector<8x256xf32> -> vector<8x256xf32>
    %64 = arith.addf %57, %63 : vector<8x256xf32>
    %c0_29 = arith.constant 0 : index
    %c34 = arith.constant 34 : index
    %65 = vector.load %arg7[%c0_29, %c34] : memref<4x290xf32, #tpu.memory_space<vmem>>, vector<4x256xf32>
    %66 = vector.extract_strided_slice %6 {offsets = [2, 0], sizes = [1, 256], strides = [1, 1]} : vector<3x256xf32> to vector<1x256xf32>
    %67 = vector.broadcast %66 : vector<1x256xf32> to vector<4x256xf32>
    %68 = arith.mulf %65, %67 : vector<4x256xf32>
    %69 = vector.extract_strided_slice %7 {offsets = [0, 32], sizes = [8, 4], strides = [1, 1]} : vector<8x36xf32> to vector<8x4xf32>
    %cst_30 = arith.constant dense<0.000000e+00> : vector<8x256xf32>
    %70 = tpu.matmul %69, %68, %cst_30 {dimension_numbers = #tpu.dot_dimension_numbers<[1], [0], [0], [1], [0, 0, 1, 1], [], []>} : vector<8x4xf32>, vector<4x256xf32>, vector<8x256xf32> -> vector<8x256xf32>
    %71 = arith.addf %64, %70 : vector<8x256xf32>
    %c0_31 = arith.constant 0 : index
    %c0_32 = arith.constant 0 : index
    %c0_33 = arith.constant 0 : index
    %72 = vector.load %arg5[%c0_31, %c0_32, %c0_33] : memref<1x8x256xf32, #tpu.memory_space<vmem>>, vector<1x8x256xf32>
    %73 = vector.shape_cast %72 : vector<1x8x256xf32> to vector<8x256xf32>
    %74 = vector.shape_cast %71 : vector<8x256xf32> to vector<1x8x256xf32>
    tpu.vector_store %arg5[%c0_31, %c0_32, %c0_33], %74 {strides = array<i32>} : memref<1x8x256xf32, #tpu.memory_space<vmem>>, vector<1x8x256xf32>,
    %c0_34 = arith.constant 0 : index
    %c0_35 = arith.constant 0 : index
    %c0_36 = arith.constant 0 : index
    %75 = vector.load %arg6[%c0_34, %c0_35, %c0_36] : memref<1x11x256xf32, #tpu.memory_space<vmem>>, vector<1x8x256xf32>
    %76 = vector.shape_cast %75 : vector<1x8x256xf32> to vector<8x256xf32>
    %77 = vector.shape_cast %71 : vector<8x256xf32> to vector<1x8x256xf32>
    tpu.vector_store %arg6[%c0_34, %c0_35, %c0_36], %77 {strides = array<i32>} : memref<1x11x256xf32, #tpu.memory_space<vmem>>, vector<1x8x256xf32>,
    %c0_37 = arith.constant 0 : index
    %c0_38 = arith.constant 0 : index
    %c0_39 = arith.constant 0 : index
    %78 = vector.load %arg4[%c0_37, %c0_38, %c0_39] : memref<1x3x256xf32, #tpu.memory_space<vmem>>, vector<1x3x256xf32>
    %79 = vector.shape_cast %78 : vector<1x3x256xf32> to vector<3x256xf32>
    %c0_40 = arith.constant 0 : index
    %c8 = arith.constant 8 : index
    %c0_41 = arith.constant 0 : index
    %80 = vector.load %arg6[%c0_40, %c8, %c0_41] : memref<1x11x256xf32, #tpu.memory_space<vmem>>, vector<1x3x256xf32>
    %81 = vector.shape_cast %80 : vector<1x3x256xf32> to vector<3x256xf32>
    %82 = vector.shape_cast %79 : vector<3x256xf32> to vector<1x3x256xf32>
    tpu.vector_store %arg6[%c0_40, %c8, %c0_41], %82 {strides = array<i32>} : memref<1x11x256xf32, #tpu.memory_space<vmem>>, vector<1x3x256xf32>,
    return
  }
  func.func @transform_0(%arg0: i32) -> (i32, i32, i32) {
    %c0_i32 = arith.constant 0 : i32
    %c0_i32_0 = arith.constant 0 : i32
    %c0_i32_1 = arith.constant 0 : i32
    return %arg0, %c0_i32, %c0_i32_0 : i32, i32, i32
  }
  func.func @transform_1(%arg0: i32) -> (i32, i32) {
    %c0_i32 = arith.constant 0 : i32
    %c0_i32_0 = arith.constant 0 : i32
    %c0_i32_1 = arith.constant 0 : i32
    return %c0_i32, %c0_i32_0 : i32, i32
  }
  func.func @transform_2(%arg0: i32) -> (i32, i32) {
    %c0_i32 = arith.constant 0 : i32
    %c0_i32_0 = arith.constant 0 : i32
    %c0_i32_1 = arith.constant 0 : i32
    return %c0_i32, %c0_i32_0 : i32, i32
  }
  func.func @transform_3(%arg0: i32) -> (i32, i32, i32) {
    %c0_i32 = arith.constant 0 : i32
    %c0_i32_0 = arith.constant 0 : i32
    %c0_i32_1 = arith.constant 0 : i32
    return %arg0, %c0_i32, %c0_i32_0 : i32, i32, i32
  }
  func.func @transform_4(%arg0: i32) -> (i32, i32, i32) {
    %c0_i32 = arith.constant 0 : i32
    %c0_i32_0 = arith.constant 0 : i32
    %c0_i32_1 = arith.constant 0 : i32
    return %arg0, %c0_i32, %c0_i32_0 : i32, i32, i32
  }
  func.func @transform_5(%arg0: i32) -> (i32, i32, i32) {
    %c0_i32 = arith.constant 0 : i32
    %c0_i32_0 = arith.constant 0 : i32
    %c0_i32_1 = arith.constant 0 : i32
    return %arg0, %c0_i32, %c0_i32_0 : i32, i32, i32
  }
}

</mosaic_0001>

<bundles_post_ra>
// kernel: dsc2d_forward.1
= control target key start
LH: loop header
LB: loop body
LE: loop exit
PB: predicated region body
PF: predicated region fallthrough
CT: control target
= control target key end

     0   :  { %s1520_s18 = smov 0   ;;  %s1650_s0 = inlined_call_operand.vmem [shape: f32[2,4,256], index: 0, kind: input, shape index: {}]   ;;  %s1651_s1 = inlined_call_operand.vmem [shape: f32[3,256], index: 1, kind: input, shape index: {}]   ;;  %s1652_s2 = inlined_call_operand.vmem [shape: f32[8,36], index: 2, kind: input, shape index: {}]   ;;  %s1653_s3 = inlined_call_operand.vmem [shape: f32[2,3,256], index: 3, kind: input, shape index: {}]   ;;  %s1654_s4 = inlined_call_operand.vmem [shape: f32[2,8,256], index: 4, kind: output, shape index: {0}]   ;;  %s1655_s5 = inlined_call_operand.vmem [shape: f32[2,11,256], index: 5, kind: output, shape index: {1}]  }
   0x1 LB: > { %s1365_s19 = sadd.s32 4294967295, %s1465_s18   ;;  %p1369_p0 = scmp.ge.s32.totalorder %s1465_s18, 1  ;;  %s1465_s18 = sphi %s1520_s18, %s16_s18  }
   0x2   : > { %p200_p1 = scmp.lt.s32.totalorder %s1465_s18, 3 }
   0x4   : > { %p201_p2 = pnand %p1369_p0, %p200_p1 }
   0x5   : > { %p238_p3 = scmp.lt.s32.totalorder (!%p201_p2), %s1365_s19, 1  ;;  %v280_v0 = vlaneseq (!%p201_p2)  ;;  %vm258_vm0 = vcmask (!%p201_p2), 134144   ;;  %v1467_v1 = vmov (!%p201_p2), 0.0   ;;  %vm260_vm1 = vcmask (!%p201_p2), 273544   ;;  %v276_v3 = vld [vmem:[%s1651_s1] sm:$0x77] (!%p201_p2) }
   0x6   : > { %204 = sbr.rel (%p201_p2) target bundleno = 532 (0x214), region = 36  ;;  %259 = vst.msk [vmem:[#allocation2] sm:$0xf] (!%p201_p2), %vm258_vm0, %v1467_v1  ;;  %830 = vmatprep.mubr.f32.mxu0 (!%p201_p2), %v1467_v1  ;;  %421 = vmatprep.mubr.f32.mxu1 (!%p201_p2), %v1467_v1  ;;  %s1468_s8 = smov (!%p201_p2), 17   ;;  %v1560_v28 = vld [vmem:[%s1652_s2] sm:$0xff] (!%p201_p2)  ;;  %vm271_vm2 = vcmask (!%p201_p2), 1043592  }
   0x7   : > { %v281_v2 = vshrl.u32 (!%p201_p2), %v280_v0, 7  ;;  %261 = vst.msk [vmem:[#allocation2 + $0x8] sm:$0xf] (!%p201_p2), %vm260_vm1, %v1467_v1  ;;  %s1469_s9 = smov (!%p201_p2), 1   ;;  %s1470_s10 = smov (!%p201_p2), 18   ;;  %vm272_vm3 = vcmask (!%p201_p2), 1047556  }
   0x8   : > { %s1471_s11 = smov (!%p201_p2), 32   ;;  %s1472_s12 = smov (!%p201_p2), 2   ;;  %vm267_vm4 = vcmask (!%p201_p2), 138240   ;;  %vm273_vm5 = vmor (!%p201_p2), %vm272_vm3, %vm271_vm2  ;;  %vm328_vm6 = vcmask (!%p201_p2), 7168   ;;  %vm948_vm7 = vcmask (!%p201_p2), 261120   ;;  %vm533_vm8 = vcmask (!%p201_p2), 15360  }
   0x9   : > { %v306_v4 = vsub.s32 (!%p201_p2), 1, %v281_v2  ;;  %v310_v5 = vsub.s32 (!%p201_p2), 5, %v281_v2  ;;  %v511_v6 = vsub.s32 (!%p201_p2), 2, %v281_v2  ;;  %v515_v7 = vsub.s32 (!%p201_p2), 6, %v281_v2  ;;  %s1473_s13 = smov (!%p201_p2), 33   ;;  %s1474_s14 = smov (!%p201_p2), 16  }
   0xa   : > { %v282_v8 = vsub.s32 (!%p201_p2), 0, %v281_v2  ;;  %v286_v9 = vsub.s32 (!%p201_p2), 4, %v281_v2  ;;  %s1475_s15 = smov (!%p201_p2), 34   ;;  %s1476_s20 = smov (!%p201_p2), 112   ;;  %vm844_vm9 = vcmask (!%p201_p2), 146432   ;;  %vm637_vm10 = vcmask (!%p201_p2), 130048  }
   0xb   : > { %v307_v12 = vrot.slane (!%p201_p2), %v276_v3, %v306_v4  ;;  %v311_v13 = vrot.slane (!%p201_p2), %v276_v3, %v310_v5  ;;  %v512_v14 = vrot.slane (!%p201_p2), %v276_v3, %v511_v6  ;;  %v516_v15 = vrot.slane (!%p201_p2), %v276_v3, %v515_v7  ;;  %s1477_s21 = smov (!%p201_p2), 124   ;;  %s1480_s24 = smov (!%p201_p2), 111  }
   0xc   : > { %v283_v17 = vrot.slane (!%p201_p2), %v276_v3, %v282_v8  ;;  %v287_v18 = vrot.slane (!%p201_p2), %v276_v3, %v286_v9  ;;  %s1481_s25 = smov (!%p201_p2), 127   ;;  %s1483_s27 = smov (!%p201_p2), 120   ;;  %vm1052_vm11 = vcmask (!%p201_p2), 269312   ;;  %vm1156_vm12 = vcmask (!%p201_p2), 277504  }
   0xd   : > { %s1657_s19 = smov (!%p238_p3, %s1365_s19), 1  ;;  %v317_v19 = vrot.slane %v307_v12, %v306_v4  ;;  %v321_v20 = vrot.slane %v311_v13, %v306_v4  ;;  %v522_v21 = vrot.slane %v512_v14, %v511_v6  ;;  %v526_v22 = vrot.slane %v516_v15, %v511_v6  ;;  %s1484_s28 = smov 96  }
   0xe   : > { %s1407_s22 = sshll.u32 %s1657_s19, 3  ;;  %s1410_s23 = sshll.u32 %s1657_s19, 5  ;;  %v293_v23 = vrot.slane %v283_v17, %v282_v8  ;;  %v297_v24 = vrot.slane %v287_v18, %v282_v8  ;;  %vm757_vm13 = vcmask 908288   ;;  %vm352_vm14 = vcmask 1043456  }
   0xf   : > { %s242_s26 = scalar_lea.vmem %s1650_s0, %s1407_s22  ;;  %s247_s29 = scalar_lea.vmem %s1653_s3, %s1407_s22  ;;  %v324_v25 = vcombine.low %v317_v19, %v321_v20  ;;  %v529_v26 = vcombine.low %v522_v21, %v526_v22  ;;  %vm349_vm15 = vcmask 31744   ;;  %vm861_vm1 = vcmask 900096  }
  0x10   : > { %s1549_s7 = scalar_lea.vmem %s1655_s5, %s1410_s23  ;;  %v262_v10 = vld [vmem:[%s242_s26] sm:$0xff]  ;;  %v1553_v27 = vcombine.low %v293_v23, %v297_v24  ;;  %s1478_s22 = smov 108   ;;  %vm965_vm2 = vcmask 785408   ;;  %vm550_vm3 = vcmask 1031168  }
  0x11   : > { %v1259_v11 = vld [vmem:[%s247_s29] sm:$0x77]  ;;  %264 = vrot.lane.b32.xlu0 %v262_v10, %s1468_s8  ;;  %325 = vrot.lane.b32.xlu1 %v324_v25, %s1469_s9  ;;  %s1479_s23 = smov 104   ;;  %s1482_s26 = smov 110  }
  0x12   : > { %v1261_v16 = vcombine.high %v1259_v11, %v1259_v11  ;;  %1263 = vst [vmem:[%s1549_s7 + $0x10] sm:$0x7] %v1259_v11  ;;  %s1485_s29 = smov 126   ;;  %s1486_s30 = smov 95  }
  0x13   : > { %s1487_s6 = smov 100   ;;  %s1489_s9 = smov 116  }
  0x14   : > { %1264 = vst [vmem:[%s1549_s7 + $0x18] sm:$0x7] %v1261_v16 }
  0x15   : > { %738 = vrot.lane.b32.xlu0 %v324_v25, %s1468_s8  ;;  %841 = vrot.lane.b32.xlu1 %v529_v26, %s1470_s10  ;;  %s1488_s8 = smov 94   ;;  %s1409_s10 = sshll.u32 %s1657_s19, 4 }
  0x19   : > { %945 = vrot.lane.b32.xlu0 %v1553_v27, %s1471_s11  ;;  %530 = vrot.lane.b32.xlu1 %v529_v26, %s1472_s12 }
  0x1d   : > { %1049 = vrot.lane.b32.xlu0 %v324_v25, %s1473_s13  ;;  %634 = vrot.lane.b32.xlu1 %v1553_v27, %s1474_s14  ;;  %s252_s13 = scalar_lea.vmem %s1654_s4, %s1409_s10 }
  0x21   : > { %1153 = vrot.lane.b32.xlu0 %v529_v26, %s1475_s15  ;;  %335 = vrot.lane.b32.xlu1 %v1560_v28, %s1477_s21 }
  0x25   : > { %746 = vrot.lane.b32.xlu0 %v1560_v28, %s1476_s20 }
  0x29   : > { %850 = vrot.lane.b32.xlu0 %v1560_v28, %s1478_s22 }
  0x2d   : > { %954 = vrot.lane.b32.xlu0 %v1560_v28, %s1479_s23 }
  0x83   : > { %v265_v29 = vpop.permute.xlu0 %264  ;;  %v326_v33 = vpop.permute.xlu1 %325 }
  0x84   : > { %v266_v30 = vrot.slane %v265_v29, 4  ;;  %v327_v35 = vrot.slane %v326_v33, 4 }
  0x86   : > { %v268_v31 = vsel %vm267_vm4, %v266_v30, %v265_v29  ;;  %275 = vst.msk [vmem:[#allocation2 + $0x8] sm:$0xf] %vm258_vm0, %v266_v30  ;;  %v329_v43 = vsel %vm328_vm6, %v327_v35, %v326_v33  ;;  %vm346_vm0 = vcmask 1039360   ;;  %vm1173_vm6 = vcmask 769024  }
  0x87   : > { %274 = vst.msk [vmem:[#allocation2] sm:$0xff] %vm273_vm5, %v268_v31  ;;  %v739_v32 = vpop.permute.xlu0 %738  ;;  %v842_v42 = vpop.permute.xlu1 %841  ;;  %vm654_vm5 = vcmask 916480  }
  0x88   : > { %v740_v34 = vrot.slane %v739_v32, 4  ;;  %v843_v46 = vrot.slane %v842_v42, 4 }
  0x8a   : > { %v741_v38 = vsel %vm267_vm4, %v740_v34, %v739_v32  ;;  %v845_v60 = vsel %vm844_vm9, %v843_v46, %v842_v42  ;;  %vm1069_vm4 = vcmask 777216  }
  0x8b   : > { %v946_v44 = vpop.permute.xlu0 %945  ;;  %v531_v50 = vpop.permute.xlu1 %530 }
  0x8c   : > { %v947_v49 = vrot.slane %v946_v44, 4  ;;  %v532_v54 = vrot.slane %v531_v50, 4 }
  0x8d   : > { %v737_v36 = vld [vmem:[#allocation2 + $0x8] sm:$0xf] }
  0x8e   : > { %v1568_v37 = vld [vmem:[#allocation2] sm:$0xff]  ;;  %v745_v39 = vmul.f32 %v740_v34, %v737_v36  ;;  %v303_v40 = vld [vmem:[#allocation2 + $0x8] sm:$0xf]  ;;  %v949_v53 = vsel %vm948_vm7, %v947_v49, %v946_v44  ;;  %v534_v57 = vsel %vm533_vm8, %v532_v54, %v531_v50 }
  0x8f   : > { %v744_v41 = vmul.f32 %v741_v38, %v1568_v37  ;;  %v333_v45 = vmul.f32 %v327_v35, %v303_v40  ;;  %v332_v47 = vmul.f32 %v329_v43, %v1568_v37  ;;  %v840_v48 = vld [vmem:[#allocation2 + $0x8] sm:$0xf]  ;;  %v952_v56 = vmul.f32 %v949_v53, %v1568_v37  ;;  %v1050_v62 = vpop.permute.xlu0 %1049  ;;  %v635_v4 = vpop.permute.xlu1 %634 }
  0x90   : > { %755 = vrot.lane.b32.xlu0 %v745_v39, %s1480_s24  ;;  %v849_v51 = vmul.f32 %v843_v46, %v840_v48  ;;  %v944_v52 = vld [vmem:[#allocation2 + $0x8] sm:$0xf]  ;;  %v537_v61 = vmul.f32 %v534_v57, %v1568_v37  ;;  %v848_v63 = vmul.f32 %v845_v60, %v1568_v37  ;;  %v1051_v0 = vrot.slane %v1050_v62, 4 }
  0x91   : > { %751 = vrot.lane.b32.xlu1 %v744_v41, %s1480_s24  ;;  %v953_v55 = vmul.f32 %v947_v49, %v944_v52  ;;  %v508_v58 = vld [vmem:[#allocation2 + $0x8] sm:$0xf]  ;;  %v750_v2 = vcombine.high %v744_v41, %v744_v41  ;;  %v339_v6 = vcombine.high %v332_v47, %v332_v47  ;;  %v636_v7 = vrot.slane %v635_v4, 4 }
  0x92   : > { %v538_v59 = vmul.f32 %v532_v54, %v508_v58  ;;  %v1048_v3 = vld [vmem:[#allocation2 + $0x8] sm:$0xf]  ;;  %v854_v8 = vcombine.high %v848_v63, %v848_v63  ;;  %v1053_v12 = vsel %vm1052_vm11, %v1051_v0, %v1050_v62  ;;  %v958_v17 = vcombine.high %v952_v56, %v952_v56 }
  0x93   : > { %v1057_v5 = vmul.f32 %v1051_v0, %v1048_v3  ;;  %v638_v9 = vsel %vm637_vm10, %v636_v7, %v635_v4  ;;  %v633_v10 = vld [vmem:[#allocation2 + $0x8] sm:$0xf]  ;;  %v1154_v14 = vpop.permute.xlu0 %1153  ;;  %v1056_v15 = vmul.f32 %v1053_v12, %v1568_v37  ;;  %v543_v21 = vcombine.high %v537_v61, %v537_v61  ;;  %v336_v31 = vpop.permute.xlu1 %335 }
  0x94   : > { %344 = vrot.lane.b32.xlu0 %v333_v45, %s1481_s25  ;;  %v642_v11 = vmul.f32 %v636_v7, %v633_v10  ;;  %v641_v13 = vmul.f32 %v638_v9, %v1568_v37  ;;  %v1155_v16 = vrot.slane %v1154_v14, 4  ;;  %v1152_v18 = vld [vmem:[#allocation2 + $0x8] sm:$0xf] }
  0x95   : > { %340 = vrot.lane.b32.xlu1 %v332_v47, %s1481_s25  ;;  %v1062_v23 = vcombine.high %v1056_v15, %v1056_v15  ;;  %v302_v47 = vmul.f32 %v1553_v27, %v1568_v37 }
  0x96   : > { %v1161_v19 = vmul.f32 %v1155_v16, %v1152_v18  ;;  %v1157_v20 = vsel %vm1156_vm12, %v1155_v16, %v1154_v14  ;;  %v647_v24 = vcombine.high %v641_v13, %v641_v13 }
  0x97   : > { %v1160_v22 = vmul.f32 %v1157_v20, %v1568_v37  ;;  %v747_v26 = vpop.permute.xlu0 %746  ;;  %v429_v52 = vcombine.high %v302_v47, %v302_v47 }
  0x98   : > { %859 = vrot.lane.b32.xlu0 %v849_v51, %s1482_s26 }
  0x99   : > { %539 = vrot.lane.b32.xlu1 %v1560_v28, %s1483_s27  ;;  %v1166_v25 = vcombine.high %v1160_v22, %v1160_v22 }
  0x9b   : > { %v851_v29 = vpop.permute.xlu0 %850 }
  0x9c   : > { %963 = vrot.lane.b32.xlu0 %v953_v55, %s1484_s28 }
  0x9d   : > { %959 = vrot.lane.b32.xlu1 %v952_v56, %s1484_s28 }
  0x9f   : > { %v955_v30 = vpop.permute.xlu0 %954 }
  0xa0   : > { %548 = vrot.lane.b32.xlu0 %v538_v59, %s1485_s29 }
  0xa1   : > { %544 = vrot.lane.b32.xlu1 %v537_v61, %s1485_s29 }
  0xa4   : > { %855 = vrot.lane.b32.xlu0 %v848_v63, %s1482_s26 }
  0xa5   : > { %753 = vrot.lane.b32.xlu1 %v750_v2, %s1480_s24 }
  0xa8   : > { %1067 = vrot.lane.b32.xlu0 %v1057_v5, %s1486_s30 }
  0xa9   : > { %342 = vrot.lane.b32.xlu1 %v339_v6, %s1481_s25 }
  0xac   : > { %1058 = vrot.lane.b32.xlu0 %v1560_v28, %s1487_s6 }
  0xad   : > { %857 = vrot.lane.b32.xlu1 %v854_v8, %s1482_s26 }
  0xb0   : > { %652 = vrot.lane.b32.xlu0 %v642_v11, %s1476_s20 }
  0xb1   : > { %648 = vrot.lane.b32.xlu1 %v641_v13, %s1476_s20 }
  0xb4   : > { %1063 = vrot.lane.b32.xlu0 %v1056_v15, %s1486_s30 }
  0xb5   : > { %961 = vrot.lane.b32.xlu1 %v958_v17, %s1484_s28 }
  0xb8   : > { %1171 = vrot.lane.b32.xlu0 %v1161_v19, %s1488_s8 }
  0xb9   : > { %546 = vrot.lane.b32.xlu1 %v543_v21, %s1485_s29 }
  0xbc   : > { %1167 = vrot.lane.b32.xlu0 %v1160_v22, %s1488_s8 }
  0xbd   : > { %1065 = vrot.lane.b32.xlu1 %v1062_v23, %s1486_s30 }
  0xc0   : > { %1162 = vrot.lane.b32.xlu0 %v1560_v28, %s1484_s28 }
  0xc1   : > { %650 = vrot.lane.b32.xlu1 %v647_v24, %s1476_s20 }
  0xc5   : > { %1169 = vrot.lane.b32.xlu1 %v1166_v25, %s1488_s8 }
  0xc9   : > { %643 = vrot.lane.b32.xlu1 %v1560_v28, %s1489_s9 }
 0x102   : > { %v756_v32 = vpop.permute.xlu0 %755 }
 0x103   : > { %v752_v33 = vpop.permute.xlu1 %751 }
 0x106   : > { %v345_v34 = vpop.permute.xlu0 %344 }
 0x107   : > { %v341_v35 = vpop.permute.xlu1 %340 }
 0x10a   : > { %v860_v36 = vpop.permute.xlu0 %859 }
 0x10b   : > { %v540_v38 = vpop.permute.xlu1 %539 }
 0x10e   : > { %v964_v39 = vpop.permute.xlu0 %963 }
 0x10f   : > { %v960_v40 = vpop.permute.xlu1 %959 }
 0x112   : > { %v549_v41 = vpop.permute.xlu0 %548 }
 0x113   : > { %v545_v42 = vpop.permute.xlu1 %544 }
 0x116   : > { %v856_v43 = vpop.permute.xlu0 %855 }
 0x117   : > { %v754_v44 = vpop.permute.xlu1 %753 }
 0x118   : > { %v759_v45 = vsel %vm757_vm13, %v754_v44, %v756_v32  ;;  %v758_v46 = vsel %vm757_vm13, %v752_v33, %v754_v44 }
 0x119   : > { %1390 = vmatprep.subr.msk.mxu0 %vm352_vm14, %v759_v45 }
 0x11a   : > { %1391 = vmatpush1.msk.msra.mxu0 %vm352_vm14, %v758_v46  ;;  %v1068_v48 = vpop.permute.xlu0 %1067 }
 0x11b   : > { %v343_v49 = vpop.permute.xlu1 %342  ;;  %1392 = vmatmul.mubr.msk.f32.vlgmr.msra.gmra.mrb[0].mxu0 %vm349_vm15, %v747_v26 }
 0x11c   : > { %v348_v50 = vsel %vm346_vm0, %v343_v49, %v345_v34  ;;  %v347_v51 = vsel %vm346_vm0, %v341_v35, %v343_v49  ;;  %934 = vmatprep.mubr.f32.mxu0 %v1467_v1 }
 0x11d   : > { %1378 = vmatprep.subr.msk.mxu1 %vm352_vm14, %v348_v50 }
 0x11e   : > { %1379 = vmatpush1.msk.msra.mxu1 %vm352_vm14, %v347_v51  ;;  %v1059_v27 = vpop.permute.xlu0 %1058 }
 0x11f   : > { %v858_v37 = vpop.permute.xlu1 %857  ;;  %1380 = vmatmul.mubr.msk.f32.vlgmr.msra.gmra.mrb[0].mxu1 %vm349_vm15, %v336_v31  ;;  %1381 = vmatprep.subr.msk.mxu1 %vm352_vm14, %v429_v52 }
 0x120   : > { %v862_v53 = vsel %vm861_vm1, %v856_v43, %v858_v37  ;;  %v863_v54 = vsel %vm861_vm1, %v858_v37, %v860_v36  ;;  %1382 = vmatpush1.msk.msra.mxu1 %vm352_vm14, %v302_v47  ;;  %500 = vmatprep.mubr.f32.mxu1 %v1467_v1 }
 0x121   : > { %1393 = vmatprep.subr.msk.mxu0 %vm352_vm14, %v863_v54 }
 0x122   : > { %1394 = vmatpush1.msk.msra.mxu0 %vm352_vm14, %v862_v53  ;;  %v653_v55 = vpop.permute.xlu0 %652 }
 0x123   : > { %v649_v56 = vpop.permute.xlu1 %648  ;;  %1395 = vmatmul.mubr.msk.f32.vlgmr.msra.gmra.mrb[0].mxu0 %vm349_vm15, %v851_v29 }
 0x124   : > { %1038 = vmatprep.mubr.f32.mxu0 %v1467_v1 }
 0x126   : > { %v1064_v58 = vpop.permute.xlu0 %1063 }
 0x127   : > { %v962_v57 = vpop.permute.xlu1 %961  ;;  %1383 = vmatmul.mubr.msk.f32.vlgmr.msra.gmra.mrb[0].mxu1 %vm349_vm15, %v1560_v28 }
 0x128   : > { %v966_v59 = vsel %vm965_vm2, %v960_v40, %v962_v57  ;;  %v967_v60 = vsel %vm965_vm2, %v962_v57, %v964_v39  ;;  %623 = vmatprep.mubr.f32.mxu1 %v1467_v1 }
 0x129   : > { %1396 = vmatprep.subr.msk.mxu0 %vm352_vm14, %v967_v60 }
 0x12a   : > { %1397 = vmatpush1.msk.msra.mxu0 %vm352_vm14, %v966_v59  ;;  %v1172_v28 = vpop.permute.xlu0 %1171 }
 0x12b   : > { %v547_v61 = vpop.permute.xlu1 %546  ;;  %1398 = vmatmul.mubr.msk.f32.vlgmr.msra.gmra.mrb[0].mxu0 %vm349_vm15, %v955_v30 }
 0x12c   : > { %v551_v62 = vsel %vm550_vm3, %v545_v42, %v547_v61  ;;  %v552_v63 = vsel %vm550_vm3, %v547_v61, %v549_v41  ;;  %1142 = vmatprep.mubr.f32.mxu0 %v1467_v1 }
 0x12d   : > { %1384 = vmatprep.subr.msk.mxu1 %vm352_vm14, %v552_v63 }
 0x12e   : > { %1385 = vmatpush1.msk.msra.mxu1 %vm352_vm14, %v551_v62  ;;  %v1168_v5 = vpop.permute.xlu0 %1167 }
 0x12f   : > { %v1066_v0 = vpop.permute.xlu1 %1065  ;;  %1386 = vmatmul.mubr.msk.f32.vlgmr.msra.gmra.mrb[0].mxu1 %vm349_vm15, %v540_v38 }
 0x130   : > { %v1070_v2 = vsel %vm1069_vm4, %v1064_v58, %v1066_v0  ;;  %v1071_v3 = vsel %vm1069_vm4, %v1066_v0, %v1068_v48  ;;  %727 = vmatprep.mubr.f32.mxu1 %v1467_v1 }
 0x131   : > { %1399 = vmatprep.subr.msk.mxu0 %vm352_vm14, %v1071_v3 }
 0x132   : > { %1400 = vmatpush1.msk.msra.mxu0 %vm352_vm14, %v1070_v2  ;;  %v1163_v11 = vpop.permute.xlu0 %1162 }
 0x133   : > { %v651_v4 = vpop.permute.xlu1 %650  ;;  %1401 = vmatmul.mubr.msk.f32.vlgmr.msra.gmra.mrb[0].mxu0 %vm349_vm15, %v1059_v27 }
 0x134   : > { %v655_v6 = vsel %vm654_vm5, %v649_v56, %v651_v4  ;;  %v656_v7 = vsel %vm654_vm5, %v651_v4, %v653_v55  ;;  %1246 = vmatprep.mubr.f32.mxu0 %v1467_v1 }
 0x135   : > { %1387 = vmatprep.subr.msk.mxu1 %vm352_vm14, %v656_v7 }
 0x136   : > { %1388 = vmatpush1.msk.msra.mxu1 %vm352_vm14, %v655_v6 }
 0x137   : > { %v1170_v8 = vpop.permute.xlu1 %1169 }
 0x138   : > { %v1174_v9 = vsel %vm1173_vm6, %v1168_v5, %v1170_v8  ;;  %v1175_v10 = vsel %vm1173_vm6, %v1170_v8, %v1172_v28 }
 0x139   : > { %1402 = vmatprep.subr.msk.mxu0 %vm352_vm14, %v1175_v10 }
 0x13a   : > { %1403 = vmatpush1.msk.msra.mxu0 %vm352_vm14, %v1174_v9 }
 0x13b   : > { %v644_v12 = vpop.permute.xlu1 %643  ;;  %1404 = vmatmul.mubr.msk.f32.vlgmr.msra.gmra.mrb[0].mxu0 %vm349_vm15, %v1163_v11 }
 0x13c   : > { %1389 = vmatmul.mubr.msk.f32.vlgmr.msra.gmra.mrb[0].mxu1 %vm349_vm15, %v644_v12 }
 0x20e   : > { %v1248_v1 = vpop.f32.mrb[0].mxu0 }
 0x20f   : > { %v729_v13 = vpop.f32.mrb[0].mxu1  ;;  %v1250_v14 = vpop.f32.mrb[1].mxu0 }
 0x210   : > { %v1411_v15 = vadd.f32 %v1248_v1, %v729_v13  ;;  %v731_v16 = vpop.f32.mrb[1].mxu1 }
 0x211   : > { %v1412_v17 = vadd.f32 %v1250_v14, %v731_v16 }
 0x212   : > { %1255 = vst [vmem:[%s252_s13] sm:$0xff] %v1411_v15  ;;  %1257 = vst [vmem:[%s1549_s7] sm:$0xff] %v1411_v15 }
 0x213   : > { %1256 = vst [vmem:[%s252_s13 + $0x8] sm:$0xff] %v1412_v17  ;;  %1258 = vst [vmem:[%s1549_s7 + $0x8] sm:$0xff] %v1412_v17 }
 0x214 PF: > { %s16_s18 = sadd.s32 1, %s1465_s18  }
 0x215   : > { %p13_p4 = scmp.ge.s32.totalorder %s16_s18, 4  }
 0x217   :  { %15 = sbr.rel (!%p13_p4) target bundleno = 1 (0x1), region = 81 }

</bundles_post_ra>
